<compile_context>
chip_gen: v7x
topology: tpu7x:2x2x1
jax: 0.10.0
libtpu: 0.0.40
codegen_flags: <defaults>
</compile_context>

<pallas_src>
import functools

import jax
import jax.numpy as jnp
from jax.experimental import pallas as pl
from jax.experimental.pallas import tpu as pltpu

BATCH = 2
IN_DIM = 20
HIDDEN = 256
OUT_DIM = 10
LANE = 128


def _round_up(n, m):
    return ((n + m - 1) // m) * m


def _mlp_kernel(x_ref, w1_ref, b1_ref, w2_ref, b2_ref, o_ref):
    # x_ref:  (TILE_B, IN_DIM)    bf16
    # w1_ref: (IN_DIM, HIDDEN)    bf16   (resident across grid steps)
    # b1_ref: (1, HIDDEN)         f32
    # w2_ref: (HIDDEN, OUT_PAD)   bf16   (zero-padded 10 -> 128 lanes)
    # b2_ref: (1, OUT_PAD)        f32
    # o_ref:  (TILE_B, OUT_PAD)   f32    (lane-dense output slab)
    h = jnp.dot(x_ref[...], w1_ref[...],
                preferred_element_type=jnp.float32)          # MXU, f32 accum
    h = jnp.maximum(h + b1_ref[...], 0.0)                     # bias + ReLU in f32 (VPU)
    out = jnp.dot(h.astype(jnp.bfloat16), w2_ref[...],
                  preferred_element_type=jnp.float32)         # MXU, f32 accum
    o_ref[...] = (out + b2_ref[...]).astype(o_ref.dtype)


@functools.partial(jax.jit)
def my_sequential_forward(x, w1, b1, w2, b2):
    batch, in_dim = x.shape
    hidden = w1.shape[1]
    out_dim = w2.shape[1]
    out_pad = _round_up(max(out_dim, LANE), LANE)             # lane-dense output width

    # Batch tile: >= 8 rows (one f32 sublane); 128 rows for realistic batches.
    tile_b = LANE if batch >= LANE else _round_up(max(batch, 8), 8)
    padded_b = _round_up(batch, tile_b)
    grid = (padded_b // tile_b,)

    # One-time pads / casts in the wrapper (fused by XLA around the custom call).
    x_p = jnp.zeros((padded_b, in_dim), jnp.bfloat16).at[:batch].set(
        x.astype(jnp.bfloat16))
    w1_b = w1.astype(jnp.bfloat16)
    b1_f = b1.astype(jnp.float32).reshape(1, hidden)
    w2_p = jnp.zeros((hidden, out_pad), jnp.bfloat16).at[:, :out_dim].set(
        w2.astype(jnp.bfloat16))
    b2_p = jnp.zeros((1, out_pad), jnp.float32).at[:, :out_dim].set(
        b2.astype(jnp.float32).reshape(1, out_dim))

    bytes_accessed = (x_p.size * 2 + w1_b.size * 2 + w2_p.size * 2
                      + b1_f.size * 4 + b2_p.size * 4 + padded_b * out_pad * 4)

    out_padded = pl.pallas_call(
        _mlp_kernel,
        out_shape=jax.ShapeDtypeStruct((padded_b, out_pad), jnp.float32),
        grid=grid,
        in_specs=[
            pl.BlockSpec((tile_b, in_dim), lambda i: (i, 0)),   # x: tiled over batch
            pl.BlockSpec((in_dim, hidden), lambda i: (0, 0)),   # w1: VMEM-resident
            pl.BlockSpec((1, hidden), lambda i: (0, 0)),        # b1: VMEM-resident
            pl.BlockSpec((hidden, out_pad), lambda i: (0, 0)),  # w2: VMEM-resident
            pl.BlockSpec((1, out_pad), lambda i: (0, 0)),       # b2: VMEM-resident
        ],
        out_specs=pl.BlockSpec((tile_b, out_pad), lambda i: (i, 0)),
        compiler_params=pltpu.CompilerParams(
            dimension_semantics=("parallel",)),                 # megacore on v7x
        cost_estimate=pl.CostEstimate(
            flops=2 * padded_b * (in_dim * hidden + hidden * out_pad),
            transcendentals=0,
            bytes_accessed=int(bytes_accessed)),
    )(x_p, w1_b, b1_f, w2_p, b2_p)

    # Slice the lane-dense slab back to the logical (batch, 10) output.
    return out_padded[:batch, :out_dim]


def _reference_bf16(x, w1, b1, w2, b2):
    # Mirrors the kernel's numerics: bf16 matmul inputs, f32 accumulation.
    h = jnp.dot(x.astype(jnp.bfloat16), w1.astype(jnp.bfloat16),
                preferred_element_type=jnp.float32) + b1
    h = jnp.maximum(h, 0.0)
    return jnp.dot(h.astype(jnp.bfloat16), w2.astype(jnp.bfloat16),
                   preferred_element_type=jnp.float32) + b2


def _reference_f32(x, w1, b1, w2, b2):
    h = jnp.maximum(x @ w1 + b1, 0.0)
    return h @ w2 + b2


if __name__ == "__main__":
    key = jax.random.PRNGKey(0)
    kx, k1, k2, k3, k4 = jax.random.split(key, 5)

    # Shapes match nn.Linear(20,256) / nn.Linear(256,10) with X = torch.rand(2, 20).
    x = jax.random.uniform(kx, (BATCH, IN_DIM), dtype=jnp.float32)
    w1 = jax.random.normal(k1, (IN_DIM, HIDDEN), dtype=jnp.float32) * 0.1
    b1 = jax.random.normal(k2, (1, HIDDEN), dtype=jnp.float32) * 0.1
    w2 = jax.random.normal(k3, (HIDDEN, OUT_DIM), dtype=jnp.float32) * 0.1
    b2 = jax.random.normal(k4, (1, OUT_DIM), dtype=jnp.float32) * 0.1

    out = my_sequential_forward(x, w1, b1, w2, b2)
    out = jax.block_until_ready(out)
    assert out.shape == (BATCH, OUT_DIM), out.shape

    # Tight check against a reference with identical bf16/f32 numerics.
    ref_bf16 = _reference_bf16(x, w1, b1, w2, b2)
    assert jnp.allclose(out, ref_bf16, atol=1e-3, rtol=1e-3), \
        "mismatch vs bf16-matmul reference"

    # Loose sanity check against the pure-f32 forward (bf16 rounding only).
    ref_f32 = _reference_f32(x, w1, b1, w2, b2)
    assert jnp.allclose(out, ref_f32, atol=3e-2, rtol=3e-2), \
        "mismatch vs f32 reference"

    print("KERNEL_OK")
</pallas_src>

<mosaic_0001>
module attributes {stable_mosaic.version = 11 : i64} {
  func.func @_mlp_kernel(%arg0: i32, %arg1: memref<8x20xbf16, #tpu.memory_space<vmem>>, %arg2: memref<20x256xbf16, #tpu.memory_space<vmem>>, %arg3: memref<1x256xf32, #tpu.memory_space<vmem>>, %arg4: memref<256x128xbf16, #tpu.memory_space<vmem>>, %arg5: memref<1x128xf32, #tpu.memory_space<vmem>>, %arg6: memref<8x128xf32, #tpu.memory_space<vmem>>) attributes {dimension_semantics = [#tpu.dimension_semantics<parallel>], iteration_bounds = array<i64: 1>, scalar_prefetch = 0 : i64, scratch_operands = 0 : i64, tpu.core_type = #tpu.core_type<tc>, window_params = [{transform_indices = @transform_0, window_bounds = array<i64: 8, 20>}, {pipeline_mode = #tpu.pipeline_mode<synchronous>, transform_indices = @transform_1, window_bounds = array<i64: 20, 256>}, {pipeline_mode = #tpu.pipeline_mode<synchronous>, transform_indices = @transform_2, window_bounds = array<i64: 1, 256>}, {pipeline_mode = #tpu.pipeline_mode<synchronous>, transform_indices = @transform_3, window_bounds = array<i64: 256, 128>}, {pipeline_mode = #tpu.pipeline_mode<synchronous>, transform_indices = @transform_4, window_bounds = array<i64: 1, 128>}, {transform_indices = @transform_5, window_bounds = array<i64: 8, 128>}]} {
    %c0 = arith.constant 0 : index
    %c0_0 = arith.constant 0 : index
    %0 = vector.load %arg1[%c0, %c0_0] : memref<8x20xbf16, #tpu.memory_space<vmem>>, vector<8x20xbf16>
    %c0_1 = arith.constant 0 : index
    %c0_2 = arith.constant 0 : index
    %1 = vector.load %arg2[%c0_1, %c0_2] : memref<20x256xbf16, #tpu.memory_space<vmem>>, vector<20x256xbf16>
    %cst = arith.constant dense<0.000000e+00> : vector<8x256xf32>
    %2 = tpu.matmul %0, %1, %cst {dimension_numbers = #tpu.dot_dimension_numbers<[1], [0], [0], [1], [0, 0, 1, 1], [], []>} : vector<8x20xbf16>, vector<20x256xbf16>, vector<8x256xf32> -> vector<8x256xf32>
    %c0_3 = arith.constant 0 : index
    %c0_4 = arith.constant 0 : index
    %3 = vector.load %arg3[%c0_3, %c0_4] : memref<1x256xf32, #tpu.memory_space<vmem>>, vector<1x256xf32>
    %4 = vector.broadcast %3 : vector<1x256xf32> to vector<8x256xf32>
    %5 = arith.addf %2, %4 : vector<8x256xf32>
    %cst_5 = arith.constant 0.000000e+00 : f32
    %6 = vector.broadcast %cst_5 : f32 to vector<8x256xf32>
    %7 = arith.maximumf %5, %6 : vector<8x256xf32>
    %8 = arith.truncf %7 : vector<8x256xf32> to vector<8x256xbf16>
    %c0_6 = arith.constant 0 : index
    %c0_7 = arith.constant 0 : index
    %9 = vector.load %arg4[%c0_6, %c0_7] : memref<256x128xbf16, #tpu.memory_space<vmem>>, vector<256x128xbf16>
    %cst_8 = arith.constant dense<0.000000e+00> : vector<8x128xf32>
    %10 = tpu.matmul %8, %9, %cst_8 {dimension_numbers = #tpu.dot_dimension_numbers<[1], [0], [0], [1], [0, 0, 1, 1], [], []>} : vector<8x256xbf16>, vector<256x128xbf16>, vector<8x128xf32> -> vector<8x128xf32>
    %c0_9 = arith.constant 0 : index
    %c0_10 = arith.constant 0 : index
    %11 = vector.load %arg5[%c0_9, %c0_10] : memref<1x128xf32, #tpu.memory_space<vmem>>, vector<1x128xf32>
    %12 = vector.broadcast %11 : vector<1x128xf32> to vector<8x128xf32>
    %13 = arith.addf %10, %12 : vector<8x128xf32>
    %c0_11 = arith.constant 0 : index
    %c0_12 = arith.constant 0 : index
    %14 = vector.load %arg6[%c0_11, %c0_12] : memref<8x128xf32, #tpu.memory_space<vmem>>, vector<8x128xf32>
    tpu.vector_store %arg6[%c0_11, %c0_12], %13 {strides = array<i32>} : memref<8x128xf32, #tpu.memory_space<vmem>>, vector<8x128xf32>,
    return
  }
  func.func @transform_0(%arg0: i32) -> (i32, i32) {
    %c0_i32 = arith.constant 0 : i32
    %c0_i32_0 = arith.constant 0 : i32
    return %arg0, %c0_i32 : i32, i32
  }
  func.func @transform_1(%arg0: i32) -> (i32, i32) {
    %c0_i32 = arith.constant 0 : i32
    %c0_i32_0 = arith.constant 0 : i32
    %c0_i32_1 = arith.constant 0 : i32
    return %c0_i32, %c0_i32_0 : i32, i32
  }
  func.func @transform_2(%arg0: i32) -> (i32, i32) {
    %c0_i32 = arith.constant 0 : i32
    %c0_i32_0 = arith.constant 0 : i32
    %c0_i32_1 = arith.constant 0 : i32
    return %c0_i32, %c0_i32_0 : i32, i32
  }
  func.func @transform_3(%arg0: i32) -> (i32, i32) {
    %c0_i32 = arith.constant 0 : i32
    %c0_i32_0 = arith.constant 0 : i32
    %c0_i32_1 = arith.constant 0 : i32
    return %c0_i32, %c0_i32_0 : i32, i32
  }
  func.func @transform_4(%arg0: i32) -> (i32, i32) {
    %c0_i32 = arith.constant 0 : i32
    %c0_i32_0 = arith.constant 0 : i32
    %c0_i32_1 = arith.constant 0 : i32
    return %c0_i32, %c0_i32_0 : i32, i32
  }
  func.func @transform_5(%arg0: i32) -> (i32, i32) {
    %c0_i32 = arith.constant 0 : i32
    %c0_i32_0 = arith.constant 0 : i32
    return %arg0, %c0_i32 : i32, i32
  }
}

</mosaic_0001>

<bundles_post_ra>
// kernel: my_sequential_forward.1
= control target key start
LH: loop header
LB: loop body
LE: loop exit
PB: predicated region body
PF: predicated region fallthrough
CT: control target
= control target key end

     0   :  { %v355_v1 = vmov 0   ;;  %vm56_vm0 = vcmask 1041408   ;;  %vm52_vm1 = vcmask 162816   ;;  %v27_v24 = vlaneseq  ;;  %s455_s1 = inlined_call_operand.vmem [shape: bf16[20,256], index: 1, kind: input, shape index: {}]   ;;  %s456_s3 = inlined_call_operand.vmem [shape: bf16[256,128], index: 3, kind: input, shape index: {}]   ;;  %s457_s0 = inlined_call_operand.vmem [shape: bf16[8,20], index: 0, kind: input, shape index: {}]   ;;  %s458_s2 = inlined_call_operand.vmem [shape: f32[1,256], index: 2, kind: input, shape index: {}]   ;;  %s459_s4 = inlined_call_operand.vmem [shape: f32[1,128], index: 4, kind: input, shape index: {}]   ;;  %s460_s5 = inlined_call_operand.vmem [shape: f32[8,128], index: 5, kind: output, shape index: {}]  }
   0x1   :  { %v24_v0 = vld [vmem:[%s455_s1 + $0x10] sm:$0x33]  ;;  %95 = vmatprep.mubr.bf16.mxu0 %v355_v1  ;;  %v334_v2 = vld [vmem:[%s455_s1 + $0x4] ss:$8 sps:$4 sm:$0xff]   ;;  %v337_v4 = vld [vmem:[%s455_s1] ss:$8 sps:$4 sm:$0xff]  }
   0x2   :  { %v291_v3 = vcombine.high %v24_v0, %v24_v0  ;;  %v290_v5 = vcombine.low %v24_v0, %v24_v0  ;;  %v339_v6 = vld [vmem:[%s456_s3 + $0x40] sm:$0xff]   ;;  %63 = vmatprep.subr.bf16.mxu0 %v334_v2  ;;  %v341_v8 = vld [vmem:[%s456_s3 + $0x48] sm:$0xff]   ;;  %v343_v11 = vld [vmem:[%s456_s3 + $0x50] sm:$0xff]   ;;  %v28_v25 = vshrl.u32 %v27_v24, 7 }
   0x3   :  { %v340_v7 = vld [vmem:[%s456_s3] sm:$0xff]   ;;  %64 = vmatpush1.bf16.msra.mxu0 %v337_v4  ;;  %311 = vmatprep.subr.bf16.mxu1 %v339_v6  ;;  %v342_v10 = vld [vmem:[%s456_s3 + $0x8] sm:$0xff]   ;;  %v344_v13 = vld [vmem:[%s456_s3 + $0x10] sm:$0xff]  }
   0x4   :  { %292 = vmatprep.subr.msk.bf16.mxu0 %vm56_vm0, %v291_v3  ;;  %v58_v9 = vsel %vm56_vm0, %v290_v5, 0  ;;  %312 = vmatpush3.bf16.msra.mxu1 %v340_v7  ;;  %v21_v12 = vld [vmem:[%s457_s0] sm:$0xf]  ;;  %v345_v14 = vld [vmem:[%s456_s3 + $0x58] sm:$0xff]   ;;  %v349_v18 = vld [vmem:[%s456_s3 + $0x68] sm:$0xff]   ;;  %v29_v26 = vsub.s32 0, %v28_v25 }
   0x5   :  { %313 = vmatprep.subr.bf16.mxu1 %v341_v8  ;;  %v346_v15 = vld [vmem:[%s456_s3 + $0x18] sm:$0xff]   ;;  %v347_v16 = vld [vmem:[%s456_s3 + $0x60] sm:$0xff]   ;;  %v350_v19 = vld [vmem:[%s456_s3 + $0x28] sm:$0xff]   ;;  %v33_v28 = vsub.s32 1, %v28_v25 }
   0x6   :  { %v348_v17 = vld [vmem:[%s456_s3 + $0x20] sm:$0xff]   ;;  %v351_v20 = vld [vmem:[%s456_s3 + $0x70] sm:$0xff]   ;;  %v353_v22 = vld [vmem:[%s456_s3 + $0x78] sm:$0xff]  }
   0x7   :  { %66 = vmatpush1.bf16.msra.mxu0 %v58_v9  ;;  %v352_v21 = vld [vmem:[%s456_s3 + $0x30] sm:$0xff]   ;;  %v354_v23 = vld [vmem:[%s456_s3 + $0x38] sm:$0xff]   ;;  %v25_v27 = vld [vmem:[%s458_s2] sm:$0x3] }
   0x8   :  { %314 = vmatpush3.bf16.msra.mxu1 %v342_v10  ;;  %v30_v29 = vrot.slane %v25_v27, %v29_v26  ;;  %v34_v30 = vrot.slane %v25_v27, %v33_v28  ;;  %v294_v42 = vld [vmem:[%s459_s4] ss:$0 sm:$0xff] }
   0x9   :  { %315 = vmatprep.subr.bf16.mxu1 %v343_v11 }
   0xa   :  { %293 = vmatmul.mubr.msk.bf16.vlgmr.msra.gmra.mrb[0].mxu0 %vm52_vm1, %v21_v12 }
   0xc   :  { %316 = vmatpush3.bf16.msra.mxu1 %v344_v13 }
   0xd   :  { %317 = vmatprep.subr.bf16.mxu1 %v345_v14 }
  0x10   :  { %318 = vmatpush3.bf16.msra.mxu1 %v346_v15 }
  0x11   :  { %319 = vmatprep.subr.bf16.mxu1 %v347_v16 }
  0x14   :  { %320 = vmatpush3.bf16.msra.mxu1 %v348_v17 }
  0x15   :  { %321 = vmatprep.subr.bf16.mxu1 %v349_v18 }
  0x18   :  { %322 = vmatpush3.bf16.msra.mxu1 %v350_v19 }
  0x19   :  { %323 = vmatprep.subr.bf16.mxu1 %v351_v20 }
  0x1c   :  { %324 = vmatpush3.bf16.msra.mxu1 %v352_v21 }
  0x1d   :  { %325 = vmatprep.subr.bf16.mxu1 %v353_v22 }
  0x20   :  { %326 = vmatpush3.bf16.msra.mxu1 %v354_v23 }
  0xdd   :  { %v97_v31 = vpop.f32.mrb[0].mxu0 }
  0xde   :  { %v98_v32 = vadd.f32 %v97_v31, %v30_v29  ;;  %v99_v33 = vpop.f32.mrb[1].mxu0 }
  0xdf   :  { %v100_v34 = vadd.f32 %v99_v33, %v34_v30  ;;  %v101_v35 = vpop.f32.mrb[2].mxu0 }
  0xe0   :  { %v104_v36 = vmax.f32 %v98_v32, 0.0  ;;  %v102_v37 = vpop.f32.mrb[3].mxu0 }
  0xe1   :  { %v105_v38 = vmax.f32 %v100_v34, 0.0 }
  0xe2   :  { %v106_v40 = vpack.c.bf16 %v104_v36, %v104_v36 }
  0xe3   :  { %v107_v39 = vpack.c.bf16 %v105_v38, %v105_v38 }
  0xe5   :  { %275 = vmatprep.mubr.bf16.mxu1 %v107_v39 }
  0xe6   :  { %276 = vmatmul.mubr.bf16.vlgmr.msra.gmra.mrb[0].mxu1 %v106_v40 }
 0x1b9   :  { %v327_v41 = vpop.f32.mrb[0].mxu1 }
 0x1ba   :  { %v328_v43 = vpop.f32.mrb[1].mxu1 }
 0x1bb   :  { %v329_v44 = vadd.f32 %v328_v43, %v327_v41  ;;  %v330_v45 = vpop.f32.mrb[2].mxu1 }
 0x1bc   :  { %v331_v46 = vpop.f32.mrb[3].mxu1 }
 0x1bd   :  { %v278_v47 = vadd.f32 %v329_v44, %v294_v42 }
 0x1bf   :  { %283 = vst [vmem:[%s460_s5] sm:$0xff] %v278_v47 }

</bundles_post_ra>
